<compile_context>
chip_gen: v6e
topology: v6e:2x2x1
jax: 0.10.0
libtpu: 0.0.40
codegen_flags: <defaults>
</compile_context>

<pallas_src>
import jax
import jax.numpy as jnp
from jax import lax
from jax.experimental import pallas as pl
from jax.experimental.pallas import tpu as pltpu


# dot_general dims: contract the last dim of both operands (x @ icv.T pattern).
_NT_DIMS = (((1,), (1,)), ((), ()))


def _adapter_kernel(x_ref, icv_unit_ref, icv_scaled_ref, o_ref):
    """One (row_tile, H) tile of rows.

    x_ref:          (row_tile, H)   input rows (any float dtype)
    icv_unit_ref:   (T_pad, H) f32  icv_i / max(||icv_i||, 1e-8)    (cosine denom)
    icv_scaled_ref: (T_pad, H) f32  -(0.1/T)*alpha_i * icv_i / max(||icv_i||, 1e-12)
    o_ref:          (row_tile, H)   output rows (input dtype)
    """
    x = x_ref[...].astype(jnp.float32)          # (R, H)
    icv_unit = icv_unit_ref[...]                # (T_pad, H)
    icv_scaled = icv_scaled_ref[...]            # (T_pad, H)

    sumsq = jnp.sum(x * x, axis=-1, keepdims=True)          # (R, 1)
    norm = jnp.sqrt(sumsq)                                   # torch.norm(x, dim=-1)
    inv_norm8 = lax.rsqrt(jnp.maximum(sumsq, 1e-16))         # 1 / max(||x||, 1e-8)
    inv_norm12 = lax.rsqrt(jnp.maximum(sumsq, 1e-24))        # 1 / max(||x||, 1e-12)

    # cos_i = <x, icv_i> / (max(||x||,1e-8) * max(||icv_i||,1e-8))  -> MXU
    dots = lax.dot_general(x, icv_unit, _NT_DIMS,
                           preferred_element_type=jnp.float32)       # (R, T_pad)
    lam = 1.0 + jnp.maximum(dots * inv_norm8, 0.0)                    # 1 + relu(cos)

    # acc = sum_i -(0.1/T) * alpha_i * lam_i * normalize(icv_i)      -> MXU
    # (zero-padded tasks have zero rows in icv_scaled -> contribute nothing)
    acc = jnp.dot(lam, icv_scaled, preferred_element_type=jnp.float32)  # (R, H)

    y = x * inv_norm12 + acc                                  # normalize(x) + acc
    y_inv = lax.rsqrt(jnp.maximum(jnp.sum(y * y, axis=-1, keepdims=True), 1e-24))
    o_ref[...] = (y * (y_inv * norm)).astype(o_ref.dtype)


def _round_up(x, m):
    return ((x + m - 1) // m) * m


def _pick_row_tile(n_rows, hidden, itemsize):
    # Mem-bound kernel (~2 flops/byte): make the row tile as large as VMEM allows.
    # Per-row budget: double-buffered in/out tiles (io dtype) + ~6 f32 full-tile
    # temporaries. Sized to stay well under v7x's 64 MiB physical VMEM
    # (v5e/v6e have 128 MiB).
    per_row = hidden * (4 * itemsize + 6 * 4)
    budget = 32 << 20
    rt = max(8, min(1024, budget // per_row))
    rt -= rt % 8
    # Keep >= ~16 grid steps when possible so v7x's two TensorCores (parallel
    # grid axis) and the DMA pipeline both have work.
    rt = min(rt, max(8, _round_up(pl.cdiv(n_rows, 16), 8)))
    return max(8, rt)


def adapter_layer(x, icvs, alpha, *, row_tile=None):
    """Pallas TPU forward of AdapterLayer. x: (B, S, H); icvs: (T, H); alpha: (T,)."""
    if icvs is None:
        return x

    B, S, H = x.shape
    R = B * S
    T = icvs.shape[0]
    itemsize = jnp.dtype(x.dtype).itemsize

    if row_tile is None:
        row_tile = _pick_row_tile(R, H, itemsize)
    R_pad = _round_up(max(R, row_tile), row_tile)
    T_pad = _round_up(T, 8)

    # ---- hoisted, row-independent per-task math (done once, outside the grid) ----
    icv_f = icvs.astype(jnp.float32)
    icv_n = jnp.sqrt(jnp.sum(icv_f * icv_f, axis=-1, keepdims=True))      # (T, 1)
    icv_unit = icv_f / jnp.maximum(icv_n, 1e-8)        # cosine-sim denominator clamp
    icv_scaled = (-(0.1 / T) * alpha.astype(jnp.float32))[:, None] * (
        icv_f / jnp.maximum(icv_n, 1e-12))             # F.normalize clamp + 0.1/T fold
    if T_pad != T:
        pad = ((0, T_pad - T), (0, 0))
        icv_unit = jnp.pad(icv_unit, pad)              # zero rows contribute nothing
        icv_scaled = jnp.pad(icv_scaled, pad)

    x2 = x.reshape(R, H)
    if R_pad != R:
        x2 = jnp.pad(x2, ((0, R_pad - R), (0, 0)))     # zero rows are harmless

    grid = (R_pad // row_tile,)
    # VMEM: double-buffered i/o tiles + f32 temporaries + two small icv tables.
    need = (4 * row_tile * H * itemsize) + (6 * row_tile * H * 4) + (4 * T_pad * H * 4)
    vmem_limit = int(min(max(2 * need, 32 << 20), 48 << 20))

    out = pl.pallas_call(
        _adapter_kernel,
        out_shape=jax.ShapeDtypeStruct((R_pad, H), x.dtype),
        grid_spec=pltpu.PrefetchScalarGridSpec(
            num_scalar_prefetch=0,
            grid=grid,
            in_specs=[
                pl.BlockSpec((row_tile, H), lambda r: (r, 0)),   # x rows
                pl.BlockSpec((T_pad, H), lambda r: (0, 0)),      # icv_unit (constant block)
                pl.BlockSpec((T_pad, H), lambda r: (0, 0)),      # icv_scaled (constant block)
            ],
            out_specs=pl.BlockSpec((row_tile, H), lambda r: (r, 0)),
        ),
        compiler_params=pltpu.CompilerParams(
            dimension_semantics=("parallel",),
            vmem_limit_bytes=vmem_limit,
        ),
        input_output_aliases={0: 0},   # output reuses x2's HBM buffer (same shape/dtype)
    )(x2, icv_unit, icv_scaled)

    if R_pad != R:
        out = out[:R]
    return out.reshape(B, S, H)


def adapter_ref(x, icvs, alpha):
    """Pure-JAX reference mirroring the PyTorch forward."""
    xf = x.astype(jnp.float32)
    norm = jnp.sqrt(jnp.sum(xf * xf, axis=-1, keepdims=True))
    acc = jnp.zeros_like(xf)
    T = icvs.shape[0]
    for i in range(T):
        icv = icvs[i].astype(jnp.float32)
        icv_n = jnp.sqrt(jnp.sum(icv * icv))
        cos = jnp.sum(xf * icv, axis=-1, keepdims=True) / (
            jnp.maximum(norm, 1e-8) * jnp.maximum(icv_n, 1e-8))
        lam = 1.0 + jnp.maximum(0.0, cos)
        acc = acc - alpha[i] * lam * (icv / jnp.maximum(icv_n, 1e-12))
    acc = 0.1 * acc / T
    x_unit = xf / jnp.maximum(norm, 1e-12)
    y = x_unit + acc
    y = y / jnp.maximum(jnp.sqrt(jnp.sum(y * y, axis=-1, keepdims=True)), 1e-12)
    return (y * norm).astype(x.dtype)


if __name__ == "__main__":
    B, S, H = 2, 8, 32
    T = 3  # number of in-context vectors (tasks)

    key = jax.random.PRNGKey(0)
    kx, kicv = jax.random.split(key)
    x = jax.random.normal(kx, (B, S, H), dtype=jnp.float32)
    icvs = jax.random.normal(kicv, (T, H), dtype=jnp.float32)   # deterministic "weights"
    alpha = jnp.array([0.1, 0.2, 0.3], dtype=jnp.float32)

    out = jax.block_until_ready(adapter_layer(x, icvs, alpha))
    ref = adapter_ref(x, icvs, alpha)
    assert out.shape == x.shape and out.dtype == x.dtype
    assert jnp.allclose(out, ref, atol=1e-3, rtol=1e-3), \
        float(jnp.max(jnp.abs(out - ref)))

    # Exercise the row-padding path (B*S not a multiple of the row tile).
    x_odd = jax.random.normal(key, (1, 5, H), dtype=jnp.float32)
    out_odd = jax.block_until_ready(adapter_layer(x_odd, icvs, alpha))
    assert jnp.allclose(out_odd, adapter_ref(x_odd, icvs, alpha), atol=1e-3, rtol=1e-3)

    print("KERNEL_OK")
</pallas_src>

<mosaic_0001>
module attributes {stable_mosaic.version = 11 : i64} {
  func.func @_adapter_kernel(%arg0: i32, %arg1: memref<8x32xf32, #tpu.memory_space<vmem>>, %arg2: memref<8x32xf32, #tpu.memory_space<vmem>>, %arg3: memref<8x32xf32, #tpu.memory_space<vmem>>, %arg4: memref<8x32xf32, #tpu.memory_space<vmem>>) attributes {dimension_semantics = [#tpu.dimension_semantics<parallel>], iteration_bounds = array<i64: 2>, scalar_prefetch = 0 : i64, scratch_operands = 0 : i64, tpu.core_type = #tpu.core_type<tc>, window_params = [{transform_indices = @transform_0, window_bounds = array<i64: 8, 32>}, {pipeline_mode = #tpu.pipeline_mode<synchronous>, transform_indices = @transform_1, window_bounds = array<i64: 8, 32>}, {pipeline_mode = #tpu.pipeline_mode<synchronous>, transform_indices = @transform_2, window_bounds = array<i64: 8, 32>}, {transform_indices = @transform_3, window_bounds = array<i64: 8, 32>}]} {
    %c0 = arith.constant 0 : index
    %c0_0 = arith.constant 0 : index
    %0 = vector.load %arg1[%c0, %c0_0] : memref<8x32xf32, #tpu.memory_space<vmem>>, vector<8x32xf32>
    %c0_1 = arith.constant 0 : index
    %c0_2 = arith.constant 0 : index
    %1 = vector.load %arg2[%c0_1, %c0_2] : memref<8x32xf32, #tpu.memory_space<vmem>>, vector<8x32xf32>
    %c0_3 = arith.constant 0 : index
    %c0_4 = arith.constant 0 : index
    %2 = vector.load %arg3[%c0_3, %c0_4] : memref<8x32xf32, #tpu.memory_space<vmem>>, vector<8x32xf32>
    %3 = arith.mulf %0, %0 : vector<8x32xf32>
    %cst = arith.constant dense<0.000000e+00> : vector<8xf32>
    %4 = vector.multi_reduction <add>, %3, %cst [1] : vector<8x32xf32> to vector<8xf32>
    %5 = vector.shape_cast %4 : vector<8xf32> to vector<8x1xf32>
    %6 = math.sqrt %5 : vector<8x1xf32>
    %cst_5 = arith.constant 1.000000e-16 : f32
    %7 = vector.broadcast %cst_5 : f32 to vector<8x1xf32>
    %8 = arith.maximumf %5, %7 : vector<8x1xf32>
    %9 = math.rsqrt %8 : vector<8x1xf32>
    %cst_6 = arith.constant 1.000000e-24 : f32
    %10 = vector.broadcast %cst_6 : f32 to vector<8x1xf32>
    %11 = arith.maximumf %5, %10 : vector<8x1xf32>
    %12 = math.rsqrt %11 : vector<8x1xf32>
    %cst_7 = arith.constant dense<0.000000e+00> : vector<8x8xf32>
    %13 = tpu.matmul %0, %1, %cst_7 {dimension_numbers = #tpu.dot_dimension_numbers<[1], [1], [0], [0], [0, 0, 1, 0], [], []>} : vector<8x32xf32>, vector<8x32xf32>, vector<8x8xf32> -> vector<8x8xf32>
    %14 = vector.broadcast %9 : vector<8x1xf32> to vector<8x8xf32>
    %15 = arith.mulf %13, %14 : vector<8x8xf32>
    %cst_8 = arith.constant 0.000000e+00 : f32
    %16 = vector.broadcast %cst_8 : f32 to vector<8x8xf32>
    %17 = arith.maximumf %15, %16 : vector<8x8xf32>
    %cst_9 = arith.constant 1.000000e+00 : f32
    %18 = vector.broadcast %cst_9 : f32 to vector<8x8xf32>
    %19 = arith.addf %18, %17 : vector<8x8xf32>
    %cst_10 = arith.constant dense<0.000000e+00> : vector<8x32xf32>
    %20 = tpu.matmul %19, %2, %cst_10 {dimension_numbers = #tpu.dot_dimension_numbers<[1], [0], [0], [1], [0, 0, 1, 1], [], []>} : vector<8x8xf32>, vector<8x32xf32>, vector<8x32xf32> -> vector<8x32xf32>
    %21 = vector.broadcast %12 : vector<8x1xf32> to vector<8x32xf32>
    %22 = arith.mulf %0, %21 : vector<8x32xf32>
    %23 = arith.addf %22, %20 : vector<8x32xf32>
    %24 = arith.mulf %23, %23 : vector<8x32xf32>
    %cst_11 = arith.constant dense<0.000000e+00> : vector<8xf32>
    %25 = vector.multi_reduction <add>, %24, %cst_11 [1] : vector<8x32xf32> to vector<8xf32>
    %26 = vector.shape_cast %25 : vector<8xf32> to vector<8x1xf32>
    %cst_12 = arith.constant 1.000000e-24 : f32
    %27 = vector.broadcast %cst_12 : f32 to vector<8x1xf32>
    %28 = arith.maximumf %26, %27 : vector<8x1xf32>
    %29 = math.rsqrt %28 : vector<8x1xf32>
    %30 = arith.mulf %29, %6 : vector<8x1xf32>
    %31 = vector.broadcast %30 : vector<8x1xf32> to vector<8x32xf32>
    %32 = arith.mulf %23, %31 : vector<8x32xf32>
    %c0_13 = arith.constant 0 : index
    %c0_14 = arith.constant 0 : index
    %33 = vector.load %arg4[%c0_13, %c0_14] : memref<8x32xf32, #tpu.memory_space<vmem>>, vector<8x32xf32>
    tpu.vector_store %arg4[%c0_13, %c0_14], %32 {strides = array<i32>} : memref<8x32xf32, #tpu.memory_space<vmem>>, vector<8x32xf32>,
    return
  }
  func.func @transform_0(%arg0: i32) -> (i32, i32) {
    %c0_i32 = arith.constant 0 : i32
    %c0_i32_0 = arith.constant 0 : i32
    return %arg0, %c0_i32 : i32, i32
  }
  func.func @transform_1(%arg0: i32) -> (i32, i32) {
    %c0_i32 = arith.constant 0 : i32
    %c0_i32_0 = arith.constant 0 : i32
    %c0_i32_1 = arith.constant 0 : i32
    return %c0_i32, %c0_i32_0 : i32, i32
  }
  func.func @transform_2(%arg0: i32) -> (i32, i32) {
    %c0_i32 = arith.constant 0 : i32
    %c0_i32_0 = arith.constant 0 : i32
    %c0_i32_1 = arith.constant 0 : i32
    return %c0_i32, %c0_i32_0 : i32, i32
  }
  func.func @transform_3(%arg0: i32) -> (i32, i32) {
    %c0_i32 = arith.constant 0 : i32
    %c0_i32_0 = arith.constant 0 : i32
    return %arg0, %c0_i32 : i32, i32
  }
}

</mosaic_0001>

<bundles_post_ra>
// kernel: tpu_custom_call.1
= control target key start
LH: loop header
LB: loop body
LE: loop exit
PB: predicated region body
PF: predicated region fallthrough
CT: control target
= control target key end

     0   :  { %8 = vsyncpa [#allocation3], 0  ;;  %s812_s0 = inlined_call_operand.hbm [shape: f32[16,32], index: 0, kind: input, shape index: {}, may-alias: {0,3}]   ;;  %s813_s1 = inlined_call_operand.vmem [shape: f32[8,32], index: 1, kind: input, shape index: {}]   ;;  %s814_s2 = inlined_call_operand.vmem [shape: f32[8,32], index: 2, kind: input, shape index: {}]   ;;  %s815_s3 = inlined_call_operand.hbm [shape: f32[16,32], index: 3, kind: output, shape index: {}, may-alias: {0,3}]  }
   0x1   :  { %10 = vsyncpa [#allocation3 + $0x1], 0 }
   0x2   :  { %11 = vsyncpa [#allocation4], 0 }
   0x3   :  { %13 = vsyncpa [#allocation4 + $0x1], 0  ;;  %s656_s12 = smov 0   ;;  %s658_s13 = smov 0  }
   0x4   :  { %s660_s14 = smov 0   ;;  %s662_s15 = smov 0  }
   0x5 LB: > { %s677_s16 = sadd.s32 4294967295, %s630_s15   ;;  %s453_s17 = sadd.s32 4294967294, %s630_s15   ;;  %s630_s15 = sphi %s662_s15, %s832_s15   ;;  %s626_s14 = sphi %s660_s14, %s831_s14   ;;  %s622_s13 = sphi %s658_s13, %s830_s13   ;;  %s618_s12 = sphi %s656_s12, %s829_s12  }
   0x6   : > { %s681_s18 = sadd.s32 1, %s630_s15   ;;  %s26_s19 = sadd.s32 1, %s626_s14 }
   0x7   : > { %s23_s20 = ssub.s32 %s630_s15, %s681_s18  ;;  %p33_p0 = scmp.ne.s32.totalorder %s626_s14, %s622_s13 }
   0x8   : > { %p24_p1 = scmp.eq.s32.totalorder %s23_s20, 0  ;;  %p34_p2 = scmp.eq.s32.totalorder %s630_s15, 0 }
   0x9   : > { %p39_p3 = scmp.ne.s32.totalorder %s622_s13, %s618_s12  ;;  %p40_p4 = scmp.eq.s32.totalorder %s677_s16, 0 }
   0xa   : > { %s693_s21 = scalar_select %p24_p1, %s626_s14, %s26_s19  }
   0xb   : > { %p695_p5 = por %p34_p2, %p33_p0  ;;  %p699_p6 = por %p40_p4, %p39_p3 }
   0xc   : > { %p105_p7 = scmp.eq.s32.totalorder %s677_s16, 1  ;;  %p111_p8 = scmp.eq.s32.totalorder %s453_s17, 1 }
   0xd   : > { %s819_s23 = scalar_select %p699_p6, 1, 0 }
   0xe   : > { %p494_p10 = scmp.lt.s32.totalorder %s630_s15, 2  ;;  %p706_p11 = por %p105_p7, %p33_p0 }
   0xf   : > { %p710_p12 = por %p111_p8, %p39_p3  ;;  %s137_s26 = sand.u32 1, %s626_s14  }
  0x10   : > { %s820_s24 = scalar_select %p706_p11, 1, 0 }
  0x11   : > { %s821_s25 = scalar_select %p710_p12, 1, 0 }
  0x12   : > { %s457_s27 = sshll.u32 %s630_s15, 7  ;;  %s456_s28 = sshll.u32 %s137_s26, 3 }
  0x13   : > { %s719_s4 = scalar_lea.hbm %s812_s0, %s457_s27  ;;  %s141_s5 = scalar_lea.vmem [#allocation2], %s456_s28 }
  0x14   : > { %s148_s6 = sshll.u32 %s141_s5, 4  ;;  %p723_p13 = pnand %p494_p10, %p695_p5  ;;  %s727_s6 = int_to_ptr.vmem [resolvable:$true] %s148_s6 }
  0x15   : > { %s138_s8 = scalar_lea.sflag [#allocation3], %s137_s26  ;;  %s538_s9 = scalar_lea.hbm %s719_s4, 128 }
  0x16   : > { %p539_p2 = scmp.ne.s32.totalorder %s719_s4, %s538_s9  ;;  %p540_p3 = pneg %p723_p13 }
  0x17   : > { %s543_s17 = scalar_lea.hbm %s812_s0, 256  ;;  %p544_p5 = scmp.lt.s32.totalorder %s719_s4, %s812_s0 }
  0x18   : > { %p541_p4 = pnand %p540_p3, %p539_p2  ;;  %p545_p8 = scmp.lt.s32.totalorder %s543_s17, %s538_s9 }
  0x1a   : > { %p542_p7 = pneg %p541_p4  ;;  %p546_p10 = por %p545_p8, %p544_p5 }
  0x1c   : > { %p547_p9 = pnand %p546_p10, %p542_p7 }
  0x1e   : > { %550 = shalt.err (!%p547_p9)
}
  0x1f   : > { %s551_s22 = scalar_lea.vmem %s727_s6, 128  ;;  %s632_s26 = smov [#allocation2]  }
  0x20   : > { %p552_p0 = scmp.ne.s32.totalorder %s727_s6, %s551_s22  ;;  %s556_s27 = sshll.u32 %s632_s26, 4  ;;  %s557_s27 = int_to_ptr.vmem [resolvable:$false] %s556_s27 }
  0x21   : > { %s558_s28 = scalar_lea.vmem %s557_s27, 256  ;;  %p559_p4 = scmp.lt.s32.totalorder %s727_s6, %s557_s27 }
  0x22   : > { %p554_p1 = pnand %p552_p0, %p540_p3  ;;  %p560_p12 = scmp.lt.s32.totalorder %s558_s28, %s551_s22 }
  0x24   : > { %p555_p2 = pneg %p554_p1  ;;  %p561_p11 = por %p560_p12, %p559_p4 }
  0x26   : > { %p562_p6 = pnand %p561_p11, %p555_p2 }
  0x28   : > { %565 = shalt.err (!%p562_p6)
}
  0x29   : > { %489 = dma.hbm_to_vmem [thread:$0]  (!%p723_p13), %s719_s4, 128, %s727_s6, %s138_s8  }
  0x2a   : > { %p823_p9 = scmp.lt.s32.totalorder %s630_s15, 3  ;;  %p824_p7 = scmp.ge.s32.totalorder %s630_s15, 1 }
  0x2c   : > { %p154_p0 = pnand %p824_p7, %p823_p9 }
  0x2d   : > { %s754_s29 = sand.u32 (!%p154_p0), 1, %s622_s13   ;;  %p825_p6 = scmp.ne.s32.totalorder (!%p154_p0), %s819_s23, 0 }
  0x2e   : > { %157 = sbr.rel (%p154_p0) target bundleno = 626 (0x272), region = 32  ;;  %s459_s30 = sshll.u32 (!%p154_p0), %s754_s29, 3 }
  0x2f   : > { %s160_s5 = scalar_lea.sflag (!%p154_p0), [#allocation3], %s754_s29  ;;  %s163_s7 = scalar_lea.vmem (!%p154_p0), [#allocation2], %s459_s30 }
  0x33   : > { %609 = dma.done.wait (%p825_p6), %s160_s5, 128  }
  0x34   : > { %611 = vsyncadd (%p825_p6), %s160_s5, 4294967168  ;;  %v633_v0 = vmov 0.0   ;;  %vm634_vm0 = vmmov 0   ;;  %vm190_vm1 = vcmask 261120   ;;  %v187_v1 = vld [vmem:[%s813_s1] sm:$0xff]  ;;  %vm284_vm2 = vcmask 64512  }
  0x35   : > { %472 = vmatprep.subr.mxu0 %v633_v0  ;;  %474 = vmatprep.mubr.msk.f32.mxu0 %vm634_vm0, %v633_v0  ;;  %v186_v2 = vld [vmem:[%s163_s7] sm:$0xff]  ;;  %s465_s9 = sshll.u32 %s677_s16, 7  ;;  %s185_s10 = scalar_lea.vmem [#allocation5], %s459_s30 }
  0x36   : > { %477 = vmatprep.subr.mxu1 %v633_v0  ;;  %479 = vmatprep.mubr.msk.f32.mxu1 %vm634_vm0, %v633_v0  ;;  %v189_v3 = vmul.f32 %v186_v2, %v186_v2  ;;  %v188_v5 = vld [vmem:[%s814_s2] sm:$0xff]  ;;  %s383_s11 = sshll.u32 %s185_s10, 4  ;;  %s381_s20 = scalar_lea.hbm %s815_s3, %s465_s9  ;;  %s384_s11 = int_to_ptr.vmem [resolvable:$true] %s383_s11 }
  0x37   : > { %473 = vmatpush3.xpose.msk.msra.mxu0 %vm190_vm1, %v187_v1  ;;  %478 = vmatpush3.msra.mxu1 %v188_v5  ;;  %s370_s22 = scalar_lea.sflag [#allocation4], %s754_s29  ;;  %s566_s26 = scalar_lea.vmem %s384_s11, 128 }
  0x38   : > { %v191_v4 = vsel %vm190_vm1, %v189_v3, 0.0  ;;  %p567_p11 = scmp.ne.s32.totalorder %s384_s11, %s566_s26  ;;  %p826_p12 = scmp.ne.s32.totalorder %s820_s24, 0 }
  0x39   : > { %192 = vadd.xlane.f32.xlu0 %v191_v4  ;;  %s635_s27 = smov [#allocation5]  }
  0x3a   : > { %475 = vmatmul.mubr.msk.f32.vlgmr.msra.gmra.mxu0 %vm190_vm1, %v186_v2  ;;  %p568_p13 = pnand %p567_p11, %p826_p12  ;;  %s570_s16 = sshll.u32 %s635_s27, 4  ;;  %s571_s16 = int_to_ptr.vmem [resolvable:$false] %s570_s16 }
  0x3b   : > { %s572_s28 = scalar_lea.vmem %s571_s16, 256  ;;  %p573_p3 = scmp.lt.s32.totalorder %s384_s11, %s571_s16 }
  0x3c   : > { %p569_p1 = pneg %p568_p13  ;;  %p574_p5 = scmp.lt.s32.totalorder %s572_s28, %s566_s26 }
  0x3e   : > { %p575_p8 = por %p574_p5, %p573_p3 }
  0x40   : > { %p576_p10 = pnand %p575_p8, %p569_p1 }
  0xc2   : > { %v193_v6 = vpop.xlane.xlu0 %192 }
  0xc3   : > { %v201_v7 = vmax.f32 %v193_v6, 1e-16  ;;  %v203_v14 = vmax.f32 %v193_v6, 1e-24  ;;  %vm196_vm3 = vcmp.eq.f32.partialorder %v193_v6, inf  ;;  %v199_v26 = vand.u32 2147483648, %v193_v6 }
  0xc4   : > { %vm198_vm4 = vcmp.eq.f32.partialorder %v193_v6, 0.0 }
  0xc5   : > { %530 = vrsqrt.f32 %v201_v7 }
  0xc6   : > { %532 = vrsqrt.f32 %v203_v14 }
  0xc7   : > { %534 = vrsqrt.f32 %v193_v6 }
  0xd2   : > { %v531_v8 = vpop.eup %530 }
  0xd3   : > { %v533_v15 = vpop.eup %532 }
  0xd4   : > { %v358_v16 = vmul.f32 %v533_v15, %v186_v2  ;;  %v535_v24 = vpop.eup %534 }
  0xd5   : > { %v195_v25 = vmul.f32 %v535_v24, %v193_v6 }
  0xd7   : > { %v197_v27 = vsel %vm196_vm3, %v193_v6, %v195_v25 }
  0xd8   : > { %v200_v29 = vsel %vm198_vm4, %v199_v26, %v197_v27 }
  0xfa   : > { %v277_v9 = vpop.f32.mrf.mxu0 }
  0xfb   : > { %v281_v10 = vmul.f32 %v531_v8, %v277_v9 }
  0xfc   : > { %v476_v11 = vpop.f32.mrf.mxu0 }
  0xfd   : > { %v282_v12 = vmax.f32 %v281_v10, 0.0 }
  0xff   : > { %v283_v13 = vadd.f32 1.0, %v282_v12 }
 0x101   : > { %480 = vmatmul.mubr.msk.f32.vlgmr.msra.gmra.mxu1 %vm284_vm2, %v283_v13 }
 0x1c1   : > { %v354_v17 = vpop.f32.mrf.mxu1 }
 0x1c2   : > { %v359_v18 = vadd.f32 %v358_v16, %v354_v17 }
 0x1c3   : > { %v481_v19 = vpop.f32.mrf.mxu1 }
 0x1c4   : > { %v360_v20 = vmul.f32 %v359_v18, %v359_v18 }
 0x1c6   : > { %v361_v21 = vsel %vm190_vm1, %v360_v20, 0.0 }
 0x1c7   : > { %362 = vadd.xlane.f32.xlu0 %v361_v21 }
 0x250   : > { %v363_v22 = vpop.xlane.xlu0 %362 }
 0x251   : > { %v364_v23 = vmax.f32 %v363_v22, 1e-24 }
 0x253   : > { %536 = vrsqrt.f32 %v364_v23 }
 0x260   : > { %v537_v28 = vpop.eup %536 }
 0x261   : > { %v366_v30 = vmul.f32 %v537_v28, %v200_v29 }
 0x263   : > { %v367_v31 = vmul.f32 %v366_v30, %v359_v18 }
 0x265   : > { %368 = vst.msk [vmem:[%s185_s10] sm:$0xff] %vm190_vm1, %v367_v31 }
 0x266   : > { %579 = shalt.err (!%p576_p10)
}
 0x267   : > { %s580_s30 = scalar_lea.hbm %s381_s20, 128  ;;  %s584_s7 = scalar_lea.hbm %s815_s3, 256 }
 0x268   : > { %p581_p2 = scmp.ne.s32.totalorder %s381_s20, %s580_s30  ;;  %p585_p7 = scmp.lt.s32.totalorder %s381_s20, %s815_s3 }
 0x269   : > { %p586_p0 = scmp.lt.s32.totalorder %s584_s7, %s580_s30 }
 0x26a   : > { %p582_p4 = pnand %p581_p2, %p826_p12 }
 0x26b   : > { %p587_p6 = por %p586_p0, %p585_p7 }
 0x26c   : > { %p583_p9 = pneg %p582_p4 }
 0x26e   : > { %p588_p11 = pnand %p587_p6, %p583_p9 }
 0x270   : > { %591 = shalt.err (!%p588_p11)
}
 0x271   : > { %484 = dma.vmem_to_hbm [thread:$0]  (%p826_p12), %s384_s11, 128, %s381_s20, %s370_s22  }
 0x272 PF: > { %s395_s23 = sand.u32 1, %s618_s12   ;;  %p827_p13 = scmp.ne.s32.totalorder %s821_s25, 0 }
 0x273   : > { %p828_p1 = scmp.ge.s32.totalorder %s630_s15, 2  ;;  %s396_s8 = scalar_lea.sflag [#allocation4], %s395_s23 }
 0x275   : > { %p491_p3 = pnand %p828_p1, %p827_p13 }
 0x277   : > { %p492_p5 = pneg %p491_p3 }
 0x279   : > { %613 = dma.done.wait (%p492_p5), %s396_s8, 128  }
 0x27a   : > { %615 = vsyncadd (%p492_p5), %s396_s8, 4294967168  ;;  %p16_p8 = scmp.ge.s32.totalorder %s681_s18, 4   ;;  %s829_s12 = smov %s622_s13 }
 0x27b   : > { %s830_s13 = smov %s626_s14  ;;  %s831_s14 = smov %s693_s21 }
 0x27c   : > { %s832_s15 = smov %s681_s18  ;;  %18 = sbr.rel (!%p16_p8) target bundleno = 5 (0x5), region = 77 }
 0x281   :  { %401 = vsyncpa [#allocation3], 1 }
 0x282   :  { %403 = vsyncpa [#allocation3 + $0x1], 1 }
 0x283   :  { %404 = vsyncpa [#allocation4], 1 }
 0x284   :  { %406 = vsyncpa [#allocation4 + $0x1], 1 }

</bundles_post_ra>
